<compile_context>
chip_gen: v6e
topology: v6e:2x2x1
jax: 0.10.0
libtpu: 0.0.40
codegen_flags: <defaults>
</compile_context>

<pallas_src>
import math

import jax
import jax.numpy as jnp
import numpy as np
from jax.experimental import pallas as pl
from jax.experimental.pallas import tpu as pltpu

_LANE = 128           # feature dims padded to multiples of this (lane-dense stores)
_SUBLANE = 8          # batch padded to a multiple of this
_MAX_BATCH_TILE = 256 # batch rows per grid step once the batch grows (MC sampling)


def _round_up(n, m):
    return ((n + m - 1) // m) * m


def _pad2(a, rows, cols):
    return jnp.pad(a, ((0, rows - a.shape[0]), (0, cols - a.shape[1])))


# ----------------------------------------------------------------------------
# Fused MLP kernel:  h = x; for each layer: h = drop(act(h @ W + b));
#                    head: mean / softplus-var split in lane-aligned halves.
# ----------------------------------------------------------------------------
def _activate(y, activation):
    if activation == "relu":
        return jnp.maximum(y, 0.0)
    if activation == "silu":
        return y * (1.0 / (1.0 + jnp.exp(-y)))
    if activation == "gelu":
        # TODO(synk): PyTorch nn.GELU() defaults to the exact erf form; the tanh
        # approximation is used here for a Mosaic/interpret-friendly lowering.
        c = math.sqrt(2.0 / math.pi)
        return 0.5 * y * (1.0 + jnp.tanh(c * (y + 0.044715 * y * y * y)))
    if activation == "none":
        return y
    raise ValueError(f"Unsupported activation: {activation}")


def _make_fused_mlp_kernel(*, num_hidden, activation, use_dropout,
                           heteroscedastic, var_eps):
    def kernel(*refs):
        idx = 0
        h = refs[idx][...]                       # (TB, In_pad) f32 activations
        idx += 1
        for _ in range(num_hidden):
            w_ref = refs[idx]                    # (In_pad, Out_pad), f32 or bf16
            idx += 1
            b_ref = refs[idx]                    # (1, Out_pad) f32
            idx += 1
            # bf16 MXU operands (when prepared that way); f32 accumulation.
            y = jax.lax.dot_general(
                h.astype(w_ref.dtype), w_ref[...],
                dimension_numbers=(((1,), (0,)), ((), ())),
                preferred_element_type=jnp.float32)
            y = y + b_ref[...]                   # (1, Out_pad) bias row broadcast
            y = _activate(y, activation)
            if use_dropout:
                y = y * refs[idx][...]           # keep-mask: 0 or 1/(1-p), f32
                idx += 1
            h = y
        w_ref = refs[idx]                        # fused head weight
        idx += 1
        b_ref = refs[idx]                        # fused head bias
        idx += 1
        y = jax.lax.dot_general(
            h.astype(w_ref.dtype), w_ref[...],
            dimension_numbers=(((1,), (0,)), ((), ())),
            preferred_element_type=jnp.float32)
        y = y + b_ref[...]
        if heteroscedastic:
            mean_ref = refs[idx]
            var_ref = refs[idx + 1]
            half = mean_ref.shape[1]             # lane-aligned split (multiple of 128)
            mean = y[:, :half]
            v = y[:, half:]
            # numerically stable softplus + eps (no exp overflow)
            var = jnp.maximum(v, 0.0) + jnp.log1p(jnp.exp(-jnp.abs(v))) + var_eps
            mean_ref[...] = mean.astype(mean_ref.dtype)
            var_ref[...] = var.astype(var_ref.dtype)
        else:
            out_ref = refs[idx]
            out_ref[...] = y.astype(out_ref.dtype)

    return kernel


# ----------------------------------------------------------------------------
# Parameter init (PyTorch nn.Linear layout / init) and one-time preparation
# ----------------------------------------------------------------------------
def _init_linear(key, in_dim, out_dim):
    kw, kb = jax.random.split(key)
    bound = 1.0 / math.sqrt(in_dim)
    w = jax.random.uniform(kw, (out_dim, in_dim), jnp.float32, -bound, bound)
    b = jax.random.uniform(kb, (out_dim,), jnp.float32, -bound, bound)
    return w, b


def init_uncertainty_mlp_params(key, input_dim, hidden_dims, output_dim,
                                uncertainty_type):
    keys = jax.random.split(key, len(hidden_dims) + 2)
    params = {"hidden": []}
    prev = input_dim
    for i, h_dim in enumerate(hidden_dims):
        params["hidden"].append(_init_linear(keys[i], prev, h_dim))
        prev = h_dim
    if uncertainty_type == "heteroscedastic":
        params["mean_w"], params["mean_b"] = _init_linear(keys[-2], prev, output_dim)
        params["var_w"], params["var_b"] = _init_linear(keys[-1], prev, output_dim)
    else:
        params["head_w"], params["head_b"] = _init_linear(keys[-2], prev, output_dim)
    return params


def prepare_params(params, uncertainty_type, *, matmul_dtype=jnp.bfloat16):
    """One-time weight prep (pad, transpose to (In, Out), cast matmul operands).

    Done once so the forward never re-pads / re-reads weights as an extra XLA op;
    bf16 weights (default) also halve the weight DMA bytes.  Biases stay f32
    (added after the f32-accumulated matmul)."""
    matmul_dtype = jnp.dtype(matmul_dtype)
    hidden = params["hidden"]
    if hidden:
        input_dim = hidden[0][0].shape[1]
    elif uncertainty_type == "heteroscedastic":
        input_dim = params["mean_w"].shape[1]
    else:
        input_dim = params["head_w"].shape[1]

    prev_pad = _round_up(input_dim, _LANE)
    layers, hidden_pads = [], []
    for (w, b) in hidden:
        out_dim = w.shape[0]
        out_pad = _round_up(out_dim, _LANE)
        w_p = _pad2(w, out_pad, prev_pad).T.astype(matmul_dtype)   # (In_pad, Out_pad)
        b_p = _pad2(b.reshape(1, -1), 1, out_pad).astype(jnp.float32)
        layers.append((w_p, b_p))
        hidden_pads.append(out_pad)
        prev_pad = out_pad

    if uncertainty_type == "heteroscedastic":
        output_dim = params["mean_w"].shape[0]
        out_pad = _round_up(output_dim, _LANE)
        # Fused heads: mean occupies lanes [0, out_pad), var lanes [out_pad, 2*out_pad).
        mw = _pad2(params["mean_w"], out_pad, prev_pad)
        vw = _pad2(params["var_w"], out_pad, prev_pad)
        head_w = jnp.concatenate([mw, vw], axis=0).T.astype(matmul_dtype)
        mb = _pad2(params["mean_b"].reshape(1, -1), 1, out_pad)
        vb = _pad2(params["var_b"].reshape(1, -1), 1, out_pad)
        head_b = jnp.concatenate([mb, vb], axis=1).astype(jnp.float32)
    else:
        output_dim = params["head_w"].shape[0]
        out_pad = _round_up(output_dim, _LANE)
        head_w = _pad2(params["head_w"], out_pad, prev_pad).T.astype(matmul_dtype)
        head_b = _pad2(params["head_b"].reshape(1, -1), 1, out_pad).astype(jnp.float32)

    weight_bytes = (sum(w.size * w.dtype.itemsize + b.size * 4 for w, b in layers)
                    + head_w.size * head_w.dtype.itemsize + head_b.size * 4)
    if weight_bytes > 24 * 1024 * 1024:
        # TODO(synk): for trunks whose weights do not fit VMEM (keep headroom for
        # v7x's 64 MiB part), fall back to a per-layer / K-tiled pipeline
        # (pltpu.emit_pipeline) instead of the fully fused single-call kernel.
        raise NotImplementedError("fused trunk too large for VMEM-resident weights")

    return {
        "uncertainty_type": uncertainty_type,
        "layers": layers,
        "hidden_pads": hidden_pads,
        "head_w": head_w,
        "head_b": head_b,
        "input_dim": input_dim,
        "in_pad": _round_up(input_dim, _LANE),
        "output_dim": output_dim,
        "out_pad": out_pad,
    }


# ----------------------------------------------------------------------------
# Forward pass (single fused pallas_call)
# ----------------------------------------------------------------------------
def uncertainty_mlp_forward(prep, x, *, training, dropout_rate=0.1,
                            activation="relu", key=None):
    """Forward pass of UncertaintyMLP. Returns {'mean': ..., 'var': ...}."""
    ut = prep["uncertainty_type"]
    layers = prep["layers"]
    heteroscedastic = (ut == "heteroscedastic")

    # nn.Dropout is active only in training; MCDropout is active in eval too.
    apply_dropout = (bool(training) or ut == "mc_dropout") and dropout_rate > 0.0
    if apply_dropout and key is None:
        raise ValueError("a PRNG key is required when dropout is active")

    B, in_dim = x.shape
    if in_dim != prep["input_dim"]:
        raise ValueError("input feature dimension mismatch")
    in_pad = prep["in_pad"]

    # Batch padding / tiling: one grid step for small B; tiled (megacore-parallel)
    # once the batch (e.g. folded MC samples) grows.
    B_pad = _round_up(max(B, _SUBLANE), _SUBLANE)
    if B_pad <= _MAX_BATCH_TILE:
        tb = B_pad
    else:
        tb = _MAX_BATCH_TILE
        B_pad = _round_up(B_pad, tb)
    n_btiles = B_pad // tb

    x_pad = _pad2(x.astype(jnp.float32), B_pad, in_pad)

    def rep(shape):   # weight/bias resident across batch tiles
        return pl.BlockSpec(shape, lambda i: (0, 0))

    def bat(cols):    # batch-tiled tensors
        return pl.BlockSpec((tb, cols), lambda i: (i, 0))

    inputs = [x_pad]
    in_specs = [bat(in_pad)]

    if apply_dropout and layers:
        keys = jax.random.split(key, len(layers))
        inv_keep = np.float32(1.0 / (1.0 - dropout_rate))

    for li, (w_p, b_p) in enumerate(layers):
        inputs += [w_p, b_p]
        in_specs += [rep(w_p.shape), rep(b_p.shape)]
        if apply_dropout:
            h_pad = w_p.shape[1]
            keep = jax.random.bernoulli(keys[li], 1.0 - dropout_rate, (B_pad, h_pad))
            inputs.append(keep.astype(jnp.float32) * inv_keep)
            in_specs.append(bat(h_pad))

    inputs += [prep["head_w"], prep["head_b"]]
    in_specs += [rep(prep["head_w"].shape), rep(prep["head_b"].shape)]

    out_pad = prep["out_pad"]
    if heteroscedastic:
        out_shape = (jax.ShapeDtypeStruct((B_pad, out_pad), jnp.float32),
                     jax.ShapeDtypeStruct((B_pad, out_pad), jnp.float32))
        out_specs = [bat(out_pad), bat(out_pad)]
    else:
        out_shape = jax.ShapeDtypeStruct((B_pad, out_pad), jnp.float32)
        out_specs = bat(out_pad)

    kernel = _make_fused_mlp_kernel(
        num_hidden=len(layers), activation=activation, use_dropout=apply_dropout,
        heteroscedastic=heteroscedastic, var_eps=1e-6)

    # Advisory cost hint for the XLA scheduler.
    flops = 0
    bytes_accessed = x_pad.size * 4
    for w_p, b_p in layers:
        flops += 2 * B_pad * w_p.shape[0] * w_p.shape[1]
        bytes_accessed += w_p.size * w_p.dtype.itemsize + b_p.size * 4
        if apply_dropout:
            bytes_accessed += B_pad * w_p.shape[1] * 4
    flops += 2 * B_pad * prep["head_w"].shape[0] * prep["head_w"].shape[1]
    bytes_accessed += (prep["head_w"].size * prep["head_w"].dtype.itemsize
                       + prep["head_b"].size * 4
                       + (2 if heteroscedastic else 1) * B_pad * out_pad * 4)
    act_transc = {"relu": 0, "none": 0}.get(activation, 1)
    transcend = act_transc * B_pad * sum(prep["hidden_pads"])
    if heteroscedastic:
        transcend += 2 * B_pad * out_pad
    cost = pl.CostEstimate(flops=int(flops), transcendentals=int(transcend),
                           bytes_accessed=int(bytes_accessed))

    result = pl.pallas_call(
        kernel,
        out_shape=out_shape,
        grid=(n_btiles,),
        in_specs=in_specs,
        out_specs=out_specs,
        compiler_params=pltpu.CompilerParams(
            dimension_semantics=("parallel",)),   # batch tiles split across TCs (v7x)
        cost_estimate=cost,
    )(*inputs)

    out_dim = prep["output_dim"]
    if heteroscedastic:
        mean_pad, var_pad = result
        return {"mean": mean_pad[:B, :out_dim], "var": var_pad[:B, :out_dim]}
    mean = result[:B, :out_dim]
    return {"mean": mean, "var": jnp.full_like(mean, 1e-6)}


def predict_with_uncertainty(prep, x, *, num_samples=30, dropout_rate=0.1,
                             activation="relu", key=None):
    """Matches UncertaintyMLP.predict_with_uncertainty.  For mc_dropout the S
    Monte-Carlo samples are folded into the batch dimension -> ONE fused kernel
    call (weights streamed once, MXU rows filled) instead of S host forwards."""
    ut = prep["uncertainty_type"]
    if ut != "mc_dropout":
        return uncertainty_mlp_forward(prep, x, training=False,
                                       dropout_rate=dropout_rate,
                                       activation=activation)
    if key is None:
        raise ValueError("a PRNG key is required for MC-dropout sampling")
    B = x.shape[0]
    x_rep = jnp.tile(x, (num_samples, 1))               # (S*B, In)
    out = uncertainty_mlp_forward(prep, x_rep, training=True,
                                  dropout_rate=dropout_rate,
                                  activation=activation, key=key)
    means = out["mean"].reshape(num_samples, B, -1)
    mean = jnp.mean(means, axis=0)
    var = jnp.var(means, axis=0, ddof=1)                 # torch.var default: unbiased
    return {"mean": mean, "var": var}


# ----------------------------------------------------------------------------
# Pure-JAX reference (eval mode, dropout off) for correctness checking
# ----------------------------------------------------------------------------
def _act_ref(y, activation):
    if activation == "relu":
        return jnp.maximum(y, 0.0)
    if activation == "silu":
        return y / (1.0 + jnp.exp(-y))
    if activation == "gelu":
        c = math.sqrt(2.0 / math.pi)
        return 0.5 * y * (1.0 + jnp.tanh(c * (y + 0.044715 * y ** 3)))
    return y


def _reference_forward_eval(params, x, *, activation, uncertainty_type):
    hp = jax.lax.Precision.HIGHEST
    h = x
    for w, b in params["hidden"]:
        h = _act_ref(jnp.dot(h, w.T, precision=hp) + b, activation)
    if uncertainty_type == "heteroscedastic":
        mean = jnp.dot(h, params["mean_w"].T, precision=hp) + params["mean_b"]
        v = jnp.dot(h, params["var_w"].T, precision=hp) + params["var_b"]
        var = jnp.maximum(v, 0.0) + jnp.log1p(jnp.exp(-jnp.abs(v))) + 1e-6
        return {"mean": mean, "var": var}
    mean = jnp.dot(h, params["head_w"].T, precision=hp) + params["head_b"]
    return {"mean": mean, "var": jnp.full_like(mean, 1e-6)}


if __name__ == "__main__":
    input_dim, hidden_dims, output_dim = 32, [384, 64], 1
    batch = 4
    dropout_rate = 0.1
    activation = "relu"

    root = jax.random.PRNGKey(0)
    k_params, k_x, k_drop, k_mc = jax.random.split(root, 4)

    params = init_uncertainty_mlp_params(
        k_params, input_dim, hidden_dims, output_dim, "heteroscedastic")
    x = jax.random.normal(k_x, (batch, input_dim), dtype=jnp.float32)

    # Eval mode, f32 weights: deterministic -> check against pure-JAX reference.
    prep_f32 = prepare_params(params, "heteroscedastic", matmul_dtype=jnp.float32)
    out_eval = uncertainty_mlp_forward(prep_f32, x, training=False,
                                       dropout_rate=dropout_rate,
                                       activation=activation)
    jax.block_until_ready(out_eval["mean"])
    ref = _reference_forward_eval(params, x, activation=activation,
                                  uncertainty_type="heteroscedastic")
    assert out_eval["mean"].shape == (batch, output_dim)
    assert out_eval["var"].shape == (batch, output_dim)
    assert bool(jnp.allclose(out_eval["mean"], ref["mean"], atol=1e-4, rtol=1e-4))
    assert bool(jnp.allclose(out_eval["var"], ref["var"], atol=1e-4, rtol=1e-4))
    assert bool(jnp.all(out_eval["var"] > 0.0))

    # Default prep: bf16 MXU operands / bf16 weights in HBM, f32 accumulation.
    prep_bf16 = prepare_params(params, "heteroscedastic")
    out_bf16 = uncertainty_mlp_forward(prep_bf16, x, training=False,
                                       dropout_rate=dropout_rate,
                                       activation=activation)
    jax.block_until_ready(out_bf16["mean"])
    assert bool(jnp.all(jnp.isfinite(out_bf16["mean"])))
    assert bool(jnp.all(out_bf16["var"] > 0.0))

    # Training mode: dropout keep-masks multiplied inside the fused kernel.
    out_train = uncertainty_mlp_forward(prep_bf16, x, training=True,
                                        dropout_rate=dropout_rate,
                                        activation=activation, key=k_drop)
    jax.block_until_ready(out_train["mean"])
    assert out_train["mean"].shape == (batch, output_dim)
    assert bool(jnp.all(jnp.isfinite(out_train["mean"])))
    assert bool(jnp.all(out_train["var"] > 0.0))

    # mc_dropout variant: dropout active even in eval, single head, fixed tiny var.
    params_mc = init_uncertainty_mlp_params(
        k_params, input_dim, hidden_dims, output_dim, "mc_dropout")
    prep_mc = prepare_params(params_mc, "mc_dropout")
    out_mc = uncertainty_mlp_forward(prep_mc, x, training=False,
                                     dropout_rate=dropout_rate,
                                     activation=activation, key=k_drop)
    jax.block_until_ready(out_mc["mean"])
    assert out_mc["mean"].shape == (batch, output_dim)
    assert bool(jnp.allclose(out_mc["var"], 1e-6))

    # predict_with_uncertainty: MC samples folded into the batch dim (one call).
    pred = predict_with_uncertainty(prep_mc, x, num_samples=8,
                                    dropout_rate=dropout_rate,
                                    activation=activation, key=k_mc)
    jax.block_until_ready(pred["mean"])
    assert pred["mean"].shape == (batch, output_dim)
    assert pred["var"].shape == (batch, output_dim)
    assert bool(jnp.all(jnp.isfinite(pred["mean"])))
    assert bool(jnp.all(pred["var"] >= 0.0))

    print("KERNEL_OK")
</pallas_src>

<mosaic_0001>
module attributes {stable_mosaic.version = 11 : i64} {
  func.func @kernel(%arg0: i32, %arg1: memref<8x128xf32, #tpu.memory_space<vmem>>, %arg2: memref<128x384xf32, #tpu.memory_space<vmem>>, %arg3: memref<1x384xf32, #tpu.memory_space<vmem>>, %arg4: memref<384x128xf32, #tpu.memory_space<vmem>>, %arg5: memref<1x128xf32, #tpu.memory_space<vmem>>, %arg6: memref<128x256xf32, #tpu.memory_space<vmem>>, %arg7: memref<1x256xf32, #tpu.memory_space<vmem>>, %arg8: memref<8x128xf32, #tpu.memory_space<vmem>>, %arg9: memref<8x128xf32, #tpu.memory_space<vmem>>) attributes {dimension_semantics = [#tpu.dimension_semantics<parallel>], iteration_bounds = array<i64: 1>, scalar_prefetch = 0 : i64, scratch_operands = 0 : i64, tpu.core_type = #tpu.core_type<tc>, window_params = [{transform_indices = @transform_0, window_bounds = array<i64: 8, 128>}, {pipeline_mode = #tpu.pipeline_mode<synchronous>, transform_indices = @transform_1, window_bounds = array<i64: 128, 384>}, {pipeline_mode = #tpu.pipeline_mode<synchronous>, transform_indices = @transform_2, window_bounds = array<i64: 1, 384>}, {pipeline_mode = #tpu.pipeline_mode<synchronous>, transform_indices = @transform_3, window_bounds = array<i64: 384, 128>}, {pipeline_mode = #tpu.pipeline_mode<synchronous>, transform_indices = @transform_4, window_bounds = array<i64: 1, 128>}, {pipeline_mode = #tpu.pipeline_mode<synchronous>, transform_indices = @transform_5, window_bounds = array<i64: 128, 256>}, {pipeline_mode = #tpu.pipeline_mode<synchronous>, transform_indices = @transform_6, window_bounds = array<i64: 1, 256>}, {transform_indices = @transform_7, window_bounds = array<i64: 8, 128>}, {transform_indices = @transform_8, window_bounds = array<i64: 8, 128>}]} {
    %c0 = arith.constant 0 : index
    %c0_0 = arith.constant 0 : index
    %0 = vector.load %arg1[%c0, %c0_0] : memref<8x128xf32, #tpu.memory_space<vmem>>, vector<8x128xf32>
    %c0_1 = arith.constant 0 : index
    %c0_2 = arith.constant 0 : index
    %1 = vector.load %arg2[%c0_1, %c0_2] : memref<128x384xf32, #tpu.memory_space<vmem>>, vector<128x384xf32>
    %cst = arith.constant dense<0.000000e+00> : vector<8x384xf32>
    %2 = tpu.matmul %0, %1, %cst {dimension_numbers = #tpu.dot_dimension_numbers<[1], [0], [0], [1], [0, 0, 1, 1], [], []>} : vector<8x128xf32>, vector<128x384xf32>, vector<8x384xf32> -> vector<8x384xf32>
    %c0_3 = arith.constant 0 : index
    %c0_4 = arith.constant 0 : index
    %3 = vector.load %arg3[%c0_3, %c0_4] : memref<1x384xf32, #tpu.memory_space<vmem>>, vector<1x384xf32>
    %4 = vector.broadcast %3 : vector<1x384xf32> to vector<8x384xf32>
    %5 = arith.addf %2, %4 : vector<8x384xf32>
    %cst_5 = arith.constant 0.000000e+00 : f32
    %6 = vector.broadcast %cst_5 : f32 to vector<8x384xf32>
    %7 = arith.maximumf %5, %6 : vector<8x384xf32>
    %c0_6 = arith.constant 0 : index
    %c0_7 = arith.constant 0 : index
    %8 = vector.load %arg4[%c0_6, %c0_7] : memref<384x128xf32, #tpu.memory_space<vmem>>, vector<384x128xf32>
    %cst_8 = arith.constant dense<0.000000e+00> : vector<8x128xf32>
    %9 = tpu.matmul %7, %8, %cst_8 {dimension_numbers = #tpu.dot_dimension_numbers<[1], [0], [0], [1], [0, 0, 1, 1], [], []>} : vector<8x384xf32>, vector<384x128xf32>, vector<8x128xf32> -> vector<8x128xf32>
    %c0_9 = arith.constant 0 : index
    %c0_10 = arith.constant 0 : index
    %10 = vector.load %arg5[%c0_9, %c0_10] : memref<1x128xf32, #tpu.memory_space<vmem>>, vector<1x128xf32>
    %11 = vector.broadcast %10 : vector<1x128xf32> to vector<8x128xf32>
    %12 = arith.addf %9, %11 : vector<8x128xf32>
    %cst_11 = arith.constant 0.000000e+00 : f32
    %13 = vector.broadcast %cst_11 : f32 to vector<8x128xf32>
    %14 = arith.maximumf %12, %13 : vector<8x128xf32>
    %c0_12 = arith.constant 0 : index
    %c0_13 = arith.constant 0 : index
    %15 = vector.load %arg6[%c0_12, %c0_13] : memref<128x256xf32, #tpu.memory_space<vmem>>, vector<128x256xf32>
    %cst_14 = arith.constant dense<0.000000e+00> : vector<8x256xf32>
    %16 = tpu.matmul %14, %15, %cst_14 {dimension_numbers = #tpu.dot_dimension_numbers<[1], [0], [0], [1], [0, 0, 1, 1], [], []>} : vector<8x128xf32>, vector<128x256xf32>, vector<8x256xf32> -> vector<8x256xf32>
    %c0_15 = arith.constant 0 : index
    %c0_16 = arith.constant 0 : index
    %17 = vector.load %arg7[%c0_15, %c0_16] : memref<1x256xf32, #tpu.memory_space<vmem>>, vector<1x256xf32>
    %18 = vector.broadcast %17 : vector<1x256xf32> to vector<8x256xf32>
    %19 = arith.addf %16, %18 : vector<8x256xf32>
    %20 = vector.extract_strided_slice %19 {offsets = [0, 0], sizes = [8, 128], strides = [1, 1]} : vector<8x256xf32> to vector<8x128xf32>
    %21 = vector.extract_strided_slice %19 {offsets = [0, 128], sizes = [8, 128], strides = [1, 1]} : vector<8x256xf32> to vector<8x128xf32>
    %cst_17 = arith.constant 0.000000e+00 : f32
    %22 = vector.broadcast %cst_17 : f32 to vector<8x128xf32>
    %23 = arith.maximumf %21, %22 : vector<8x128xf32>
    %24 = math.absf %21 : vector<8x128xf32>
    %cst_18 = arith.constant 0.000000e+00 : f32
    %25 = vector.broadcast %cst_18 : f32 to vector<8x128xf32>
    %26 = arith.subf %25, %24 : vector<8x128xf32>
    %27 = math.exp %26 : vector<8x128xf32>
    %28 = math.log1p %27 : vector<8x128xf32>
    %29 = arith.addf %23, %28 : vector<8x128xf32>
    %cst_19 = arith.constant 9.99999997E-7 : f32
    %30 = vector.broadcast %cst_19 : f32 to vector<8x128xf32>
    %31 = arith.addf %29, %30 : vector<8x128xf32>
    %c0_20 = arith.constant 0 : index
    %c0_21 = arith.constant 0 : index
    %32 = vector.load %arg8[%c0_20, %c0_21] : memref<8x128xf32, #tpu.memory_space<vmem>>, vector<8x128xf32>
    tpu.vector_store %arg8[%c0_20, %c0_21], %20 {strides = array<i32>} : memref<8x128xf32, #tpu.memory_space<vmem>>, vector<8x128xf32>,
    %c0_22 = arith.constant 0 : index
    %c0_23 = arith.constant 0 : index
    %33 = vector.load %arg9[%c0_22, %c0_23] : memref<8x128xf32, #tpu.memory_space<vmem>>, vector<8x128xf32>
    tpu.vector_store %arg9[%c0_22, %c0_23], %31 {strides = array<i32>} : memref<8x128xf32, #tpu.memory_space<vmem>>, vector<8x128xf32>,
    return
  }
  func.func @transform_0(%arg0: i32) -> (i32, i32) {
    %c0_i32 = arith.constant 0 : i32
    %c0_i32_0 = arith.constant 0 : i32
    return %arg0, %c0_i32 : i32, i32
  }
  func.func @transform_1(%arg0: i32) -> (i32, i32) {
    %c0_i32 = arith.constant 0 : i32
    %c0_i32_0 = arith.constant 0 : i32
    %c0_i32_1 = arith.constant 0 : i32
    return %c0_i32, %c0_i32_0 : i32, i32
  }
  func.func @transform_2(%arg0: i32) -> (i32, i32) {
    %c0_i32 = arith.constant 0 : i32
    %c0_i32_0 = arith.constant 0 : i32
    %c0_i32_1 = arith.constant 0 : i32
    return %c0_i32, %c0_i32_0 : i32, i32
  }
  func.func @transform_3(%arg0: i32) -> (i32, i32) {
    %c0_i32 = arith.constant 0 : i32
    %c0_i32_0 = arith.constant 0 : i32
    %c0_i32_1 = arith.constant 0 : i32
    return %c0_i32, %c0_i32_0 : i32, i32
  }
  func.func @transform_4(%arg0: i32) -> (i32, i32) {
    %c0_i32 = arith.constant 0 : i32
    %c0_i32_0 = arith.constant 0 : i32
    %c0_i32_1 = arith.constant 0 : i32
    return %c0_i32, %c0_i32_0 : i32, i32
  }
  func.func @transform_5(%arg0: i32) -> (i32, i32) {
    %c0_i32 = arith.constant 0 : i32
    %c0_i32_0 = arith.constant 0 : i32
    %c0_i32_1 = arith.constant 0 : i32
    return %c0_i32, %c0_i32_0 : i32, i32
  }
  func.func @transform_6(%arg0: i32) -> (i32, i32) {
    %c0_i32 = arith.constant 0 : i32
    %c0_i32_0 = arith.constant 0 : i32
    %c0_i32_1 = arith.constant 0 : i32
    return %c0_i32, %c0_i32_0 : i32, i32
  }
  func.func @transform_7(%arg0: i32) -> (i32, i32) {
    %c0_i32 = arith.constant 0 : i32
    %c0_i32_0 = arith.constant 0 : i32
    return %arg0, %c0_i32 : i32, i32
  }
  func.func @transform_8(%arg0: i32) -> (i32, i32) {
    %c0_i32 = arith.constant 0 : i32
    %c0_i32_0 = arith.constant 0 : i32
    return %arg0, %c0_i32 : i32, i32
  }
}

</mosaic_0001>

<bundles_post_ra>
// kernel: tpu_custom_call.1
= control target key start
LH: loop header
LB: loop body
LE: loop exit
PB: predicated region body
PF: predicated region fallthrough
CT: control target
= control target key end

     0   :  { %14 = vsyncpa [#allocation3], 0  ;;  %s1078_s0 = inlined_call_operand.hbm [shape: f32[8,128], index: 0, kind: input, shape index: {}]   ;;  %s1079_s1 = inlined_call_operand.hbm [shape: f32[128,384], index: 1, kind: input, shape index: {}]   ;;  %s1080_s2 = inlined_call_operand.vmem [shape: f32[1,384], index: 2, kind: input, shape index: {}]   ;;  %s1081_s3 = inlined_call_operand.hbm [shape: f32[384,128], index: 3, kind: input, shape index: {}]   ;;  %s1082_s4 = inlined_call_operand.vmem [shape: f32[1,128], index: 4, kind: input, shape index: {}]   ;;  %s1083_s5 = inlined_call_operand.hbm [shape: f32[128,256], index: 5, kind: input, shape index: {}]   ;;  %s1084_s6 = inlined_call_operand.vmem [shape: f32[1,256], index: 6, kind: input, shape index: {}]   ;;  %s1085_s7 = inlined_call_operand.hbm [shape: f32[8,128], index: 7, kind: output, shape index: {0}]   ;;  %s1086_s8 = inlined_call_operand.hbm [shape: f32[8,128], index: 8, kind: output, shape index: {1}]  }
   0x1   :  { %15 = vsyncpa [#allocation6], 0 }
   0x2   :  { %16 = vsyncpa [#allocation9], 0 }
   0x3   :  { %17 = vsyncpa [#allocation4], 0 }
   0x4   :  { %18 = vsyncpa [#allocation12], 0  ;;  %s941_s27 = smov [#allocation5]  }
   0x5   :  { %s34_s28 = sshll.u32 %s941_s27, 4  ;;  %s35_s28 = int_to_ptr.vmem [resolvable:$true] %s34_s28 }
   0x6   :  { %s819_s29 = scalar_lea.vmem %s35_s28, 6144  ;;  %p824_p1 = scmp.lt.s32.totalorder %s35_s28, %s35_s28 }
   0x7   :  { %p820_p0 = scmp.ne.s32.totalorder %s35_s28, %s819_s29  ;;  %p825_p2 = scmp.lt.s32.totalorder %s819_s29, %s819_s29 }
   0x9   :  { %p826_p3 = por %p825_p2, %p824_p1 }
   0xb   :  { %p827_p4 = pnand %p826_p3, %p820_p0 }
   0xd   :  { %830 = shalt.err (!%p827_p4)
}
   0xe   :  { %s942_s30 = smov 384   ;;  %s943_s9 = smov 24  }
   0xf   :  { %40 = dma.hbm_to_vmem [thread:$0]  %s1079_s1, 6144, %s35_s28, [#allocation6], %s942_s30, %s942_s30, %s943_s9  }
  0x10   :  { %s944_s12 = smov [#allocation2]   ;;  %s945_s14 = smov [#allocation7]  }
  0x11   :  { %s25_s13 = sshll.u32 %s944_s12, 4  ;;  %s48_s15 = sshll.u32 %s945_s14, 4  ;;  %s26_s13 = int_to_ptr.vmem [resolvable:$true] %s25_s13  ;;  %s49_s15 = int_to_ptr.vmem [resolvable:$true] %s48_s15 }
  0x12   :  { %s839_s16 = scalar_lea.vmem %s26_s13, 128  ;;  %p844_p6 = scmp.lt.s32.totalorder %s26_s13, %s26_s13 }
  0x13   :  { %p840_p5 = scmp.ne.s32.totalorder %s26_s13, %s839_s16  ;;  %p845_p7 = scmp.lt.s32.totalorder %s839_s16, %s839_s16 }
  0x15   :  { %p846_p8 = por %p845_p7, %p844_p6 }
  0x17   :  { %p847_p9 = pnand %p846_p8, %p840_p5 }
  0x19   :  { %850 = shalt.err (!%p847_p9)
}
  0x1a   :  { %28 = dma.hbm_to_vmem [thread:$0]  %s1078_s0, 128, %s26_s13, [#allocation3]  }
  0x1b   :  { %s859_s19 = scalar_lea.vmem %s49_s15, 6144  ;;  %p864_p11 = scmp.lt.s32.totalorder %s49_s15, %s49_s15 }
  0x1c   :  { %p860_p10 = scmp.ne.s32.totalorder %s49_s15, %s859_s19  ;;  %p865_p12 = scmp.lt.s32.totalorder %s859_s19, %s859_s19 }
  0x1e   :  { %p866_p13 = por %p865_p12, %p864_p11 }
  0x20   :  { %p867_p0 = pnand %p866_p13, %p860_p10 }
  0x22   :  { %870 = shalt.err (!%p867_p0)
}
  0x23   :  { %s946_s1 = smov 128   ;;  %s947_s20 = smov 8  }
  0x24   :  { %54 = dma.hbm_to_vmem [thread:$0]  %s1081_s3, 6144, %s49_s15, [#allocation6], %s946_s1, %s946_s1, %s947_s20  }
  0x25   :  { %s948_s23 = smov [#allocation8]  }
  0x26   :  { %s62_s24 = sshll.u32 %s948_s23, 4  ;;  %s63_s24 = int_to_ptr.vmem [resolvable:$true] %s62_s24 }
  0x27   :  { %s879_s25 = scalar_lea.vmem %s63_s24, 4096  ;;  %p884_p2 = scmp.lt.s32.totalorder %s63_s24, %s63_s24 }
  0x28   :  { %p880_p1 = scmp.ne.s32.totalorder %s63_s24, %s879_s25  ;;  %p885_p3 = scmp.lt.s32.totalorder %s879_s25, %s879_s25 }
  0x2a   :  { %p886_p4 = por %p885_p3, %p884_p2 }
  0x2c   :  { %p887_p5 = pnand %p886_p4, %p880_p1 }
  0x2e   :  { %890 = shalt.err (!%p887_p5)
}
  0x2f   :  { %s949_s0 = smov 256   ;;  %s950_s26 = smov 16  }
  0x30   :  { %68 = dma.hbm_to_vmem [thread:$0]  %s1083_s5, 4096, %s63_s24, [#allocation9], %s949_s0, %s949_s0, %s950_s26  }
  0x31   :  { %931 = dma.done.wait [#allocation3], 128  }
  0x32   :  { %932 = vsyncadd [#allocation3], 4294967168 }
  0x33   :  { %933 = dma.done.wait [#allocation6], 12288  }
  0x34   :  { %934 = vsyncadd [#allocation6], 4294955008 }
  0x35   :  { %935 = dma.done.wait [#allocation9], 4096  }
  0x36   :  { %936 = vsyncadd [#allocation9], 4294963200  ;;  %v951_v0 = vmov 0.0   ;;  %vm952_vm0 = vmmov 0   ;;  %v130_v1 = vld [vmem:[#allocation5 + $0x170] sm:$0xff]  ;;  %v129_v2 = vld [vmem:[#allocation5 + $0x168] sm:$0xff] }
  0x37   :  { %723 = vmatprep.subr.mxu1 %v951_v0  ;;  %213 = vmatprep.mubr.f32.mxu0 %v951_v0  ;;  %v127_v3 = vld [vmem:[#allocation5 + $0x158] sm:$0xff]  ;;  %v126_v4 = vld [vmem:[#allocation5 + $0x150] sm:$0xff]  ;;  %v124_v5 = vld [vmem:[#allocation5 + $0x140] sm:$0xff]  ;;  %s953_s10 = smov [#allocation10]  }
  0x38   :  { %755 = vmatprep.mubr.msk.f32.mxu1 %vm952_vm0, %v951_v0  ;;  %149 = vmatprep.subr.mxu0 %v130_v1  ;;  %v123_v6 = vld [vmem:[#allocation5 + $0x138] sm:$0xff]  ;;  %v121_v8 = vld [vmem:[#allocation5 + $0x128] sm:$0xff]  ;;  %v128_v9 = vld [vmem:[#allocation5 + $0x160] sm:$0xff]  ;;  %s628_s11 = sshll.u32 %s953_s10, 4  ;;  %s629_s11 = int_to_ptr.vmem [resolvable:$true] %s628_s11 }
  0x39   :  { %150 = vmatpush1.msra.mxu0 %v129_v2  ;;  %v131_v7 = vld [vmem:[#allocation5 + $0x178] sm:$0xff]  ;;  %v120_v10 = vld [vmem:[#allocation5 + $0x120] sm:$0xff]  ;;  %v125_v11 = vld [vmem:[#allocation5 + $0x148] sm:$0xff]  ;;  %p896_p7 = scmp.lt.s32.totalorder %s629_s11, %s629_s11 }
  0x3a   :  { %151 = vmatprep.subr.mxu0 %v127_v3  ;;  %724 = vmatpush3.msra.mxu1 %v131_v7  ;;  %v118_v12 = vld [vmem:[#allocation5 + $0x110] sm:$0xff]  ;;  %v117_v13 = vld [vmem:[#allocation5 + $0x108] sm:$0xff]  ;;  %v115_v15 = vld [vmem:[#allocation5 + $0xf8] sm:$0xff] }
  0x3b   :  { %152 = vmatpush1.msra.mxu0 %v126_v4  ;;  %725 = vmatprep.subr.mxu1 %v951_v0  ;;  %v122_v14 = vld [vmem:[#allocation5 + $0x130] sm:$0xff]  ;;  %v119_v17 = vld [vmem:[#allocation5 + $0x118] sm:$0xff]  ;;  %v112_v18 = vld [vmem:[#allocation5 + $0xe0] sm:$0xff] }
  0x3c   :  { %153 = vmatprep.subr.mxu0 %v124_v5  ;;  %726 = vmatpush3.msra.mxu1 %v128_v9  ;;  %v114_v16 = vld [vmem:[#allocation5 + $0xf0] sm:$0xff]  ;;  %v111_v19 = vld [vmem:[#allocation5 + $0xd8] sm:$0xff]  ;;  %v116_v20 = vld [vmem:[#allocation5 + $0x100] sm:$0xff] }
  0x3d   :  { %154 = vmatpush1.msra.mxu0 %v123_v6  ;;  %727 = vmatprep.subr.mxu1 %v951_v0  ;;  %v109_v21 = vld [vmem:[#allocation5 + $0xc8] sm:$0xff]  ;;  %v108_v22 = vld [vmem:[#allocation5 + $0xc0] sm:$0xff]  ;;  %v106_v24 = vld [vmem:[#allocation5 + $0xb0] sm:$0xff] }
  0x3e   :  { %155 = vmatprep.subr.mxu0 %v121_v8  ;;  %728 = vmatpush3.msra.mxu1 %v125_v11  ;;  %v113_v23 = vld [vmem:[#allocation5 + $0xe8] sm:$0xff]  ;;  %v110_v26 = vld [vmem:[#allocation5 + $0xd0] sm:$0xff]  ;;  %v103_v27 = vld [vmem:[#allocation5 + $0x98] sm:$0xff] }
  0x3f   :  { %156 = vmatpush1.msra.mxu0 %v120_v10  ;;  %729 = vmatprep.subr.mxu1 %v951_v0  ;;  %v105_v25 = vld [vmem:[#allocation5 + $0xa8] sm:$0xff]  ;;  %v102_v28 = vld [vmem:[#allocation5 + $0x90] sm:$0xff]  ;;  %v107_v29 = vld [vmem:[#allocation5 + $0xb8] sm:$0xff] }
  0x40   :  { %157 = vmatprep.subr.mxu0 %v118_v12  ;;  %730 = vmatpush3.msra.mxu1 %v122_v14  ;;  %v100_v30 = vld [vmem:[#allocation5 + $0x80] sm:$0xff]  ;;  %v99_v31 = vld [vmem:[#allocation5 + $0x78] sm:$0xff]  ;;  %v97_v33 = vld [vmem:[#allocation5 + $0x68] sm:$0xff] }
  0x41   :  { %158 = vmatpush1.msra.mxu0 %v117_v13  ;;  %731 = vmatprep.subr.mxu1 %v951_v0  ;;  %v104_v32 = vld [vmem:[#allocation5 + $0xa0] sm:$0xff]  ;;  %v101_v35 = vld [vmem:[#allocation5 + $0x88] sm:$0xff]  ;;  %v94_v36 = vld [vmem:[#allocation5 + $0x50] sm:$0xff] }
  0x42   :  { %159 = vmatprep.subr.mxu0 %v115_v15  ;;  %732 = vmatpush3.msra.mxu1 %v119_v17  ;;  %v96_v34 = vld [vmem:[#allocation5 + $0x60] sm:$0xff]  ;;  %v93_v37 = vld [vmem:[#allocation5 + $0x48] sm:$0xff]  ;;  %v98_v38 = vld [vmem:[#allocation5 + $0x70] sm:$0xff] }
  0x43   :  { %160 = vmatpush1.msra.mxu0 %v114_v16  ;;  %733 = vmatprep.subr.mxu1 %v951_v0  ;;  %v91_v39 = vld [vmem:[#allocation5 + $0x38] sm:$0xff]  ;;  %v90_v40 = vld [vmem:[#allocation5 + $0x30] sm:$0xff]  ;;  %v88_v42 = vld [vmem:[#allocation5 + $0x20] sm:$0xff] }
  0x44   :  { %161 = vmatprep.subr.mxu0 %v112_v18  ;;  %734 = vmatpush3.msra.mxu1 %v116_v20  ;;  %v95_v41 = vld [vmem:[#allocation5 + $0x58] sm:$0xff]  ;;  %v92_v44 = vld [vmem:[#allocation5 + $0x40] sm:$0xff]  ;;  %v85_v45 = vld [vmem:[#allocation5 + $0x8] sm:$0xff] }
  0x45   :  { %162 = vmatpush1.msra.mxu0 %v111_v19  ;;  %735 = vmatprep.subr.mxu1 %v951_v0  ;;  %v87_v43 = vld [vmem:[#allocation5 + $0x18] sm:$0xff]  ;;  %v84_v46 = vld [vmem:[#allocation5] sm:$0xff]  ;;  %v89_v47 = vld [vmem:[#allocation5 + $0x28] sm:$0xff] }
  0x46   :  { %163 = vmatprep.subr.mxu0 %v109_v21  ;;  %736 = vmatpush3.msra.mxu1 %v113_v23  ;;  %v83_v48 = vld [vmem:[#allocation2] sm:$0xff]  ;;  %v86_v49 = vld [vmem:[#allocation5 + $0x10] sm:$0xff]  ;;  %v322_v55 = vld [vmem:[#allocation7 + $0xe8] sm:$0xff] }
  0x47   :  { %164 = vmatpush1.msra.mxu0 %v108_v22  ;;  %737 = vmatprep.subr.mxu1 %v951_v0  ;;  %v324_v50 = vld [vmem:[#allocation7 + $0xf8] sm:$0xff]  ;;  %v323_v52 = vld [vmem:[#allocation7 + $0xf0] sm:$0xff]  ;;  %v306_v56 = vld [vmem:[#allocation7 + $0x68] sm:$0xff] }
  0x48   :  { %165 = vmatprep.subr.mxu0 %v106_v24  ;;  %738 = vmatpush3.msra.mxu1 %v110_v26  ;;  %v308_v51 = vld [vmem:[#allocation7 + $0x78] sm:$0xff]  ;;  %v307_v53 = vld [vmem:[#allocation7 + $0x70] sm:$0xff]  ;;  %v321_v58 = vld [vmem:[#allocation7 + $0xe0] sm:$0xff] }
  0x49   :  { %166 = vmatpush1.msra.mxu0 %v105_v25  ;;  %739 = vmatprep.subr.mxu1 %v951_v0  ;;  %v340_v54 = vld [vmem:[#allocation7 + $0x178] sm:$0xff]  ;;  %v339_v57 = vld [vmem:[#allocation7 + $0x170] sm:$0xff]  ;;  %v305_v59 = vld [vmem:[#allocation7 + $0x60] sm:$0xff] }
  0x4a   :  { %167 = vmatprep.subr.mxu0 %v103_v27  ;;  %740 = vmatpush3.msra.mxu1 %v107_v29  ;;  %v338_v60 = vld [vmem:[#allocation7 + $0x168] sm:$0xff]  ;;  %v320_v61 = vld [vmem:[#allocation7 + $0xd8] sm:$0xff]  ;;  %v337_v63 = vld [vmem:[#allocation7 + $0x160] sm:$0xff] }
  0x4b   :  { %168 = vmatpush1.msra.mxu0 %v102_v28  ;;  %741 = vmatprep.subr.mxu1 %v951_v0  ;;  %v304_v62 = vld [vmem:[#allocation7 + $0x58] sm:$0xff]  ;;  %v319_v1 = vld [vmem:[#allocation7 + $0xd0] sm:$0xff]  ;;  %v318_v4 = vld [vmem:[#allocation7 + $0xc8] sm:$0xff] }
  0x4c   :  { %169 = vmatprep.subr.mxu0 %v100_v30  ;;  %742 = vmatpush3.msra.mxu1 %v104_v32  ;;  %v303_v2 = vld [vmem:[#allocation7 + $0x50] sm:$0xff]  ;;  %v336_v3 = vld [vmem:[#allocation7 + $0x158] sm:$0xff]  ;;  %v302_v5 = vld [vmem:[#allocation7 + $0x48] sm:$0xff] }
  0x4d   :  { %170 = vmatpush1.msra.mxu0 %v99_v31  ;;  %743 = vmatprep.subr.mxu1 %v951_v0  ;;  %v335_v6 = vld [vmem:[#allocation7 + $0x150] sm:$0xff]  ;;  %v317_v7 = vld [vmem:[#allocation7 + $0xc0] sm:$0xff]  ;;  %v334_v9 = vld [vmem:[#allocation7 + $0x148] sm:$0xff] }
  0x4e   :  { %171 = vmatprep.subr.mxu0 %v97_v33  ;;  %744 = vmatpush3.msra.mxu1 %v101_v35  ;;  %v301_v8 = vld [vmem:[#allocation7 + $0x40] sm:$0xff]  ;;  %v316_v10 = vld [vmem:[#allocation7 + $0xb8] sm:$0xff]  ;;  %v315_v13 = vld [vmem:[#allocation7 + $0xb0] sm:$0xff] }
  0x4f   :  { %172 = vmatpush1.msra.mxu0 %v96_v34  ;;  %745 = vmatprep.subr.mxu1 %v951_v0  ;;  %v300_v11 = vld [vmem:[#allocation7 + $0x38] sm:$0xff]  ;;  %v333_v12 = vld [vmem:[#allocation7 + $0x140] sm:$0xff]  ;;  %v299_v14 = vld [vmem:[#allocation7 + $0x30] sm:$0xff] }
  0x50   :  { %173 = vmatprep.subr.mxu0 %v94_v36  ;;  %746 = vmatpush3.msra.mxu1 %v98_v38  ;;  %v332_v15 = vld [vmem:[#allocation7 + $0x138] sm:$0xff]  ;;  %v314_v16 = vld [vmem:[#allocation7 + $0xa8] sm:$0xff]  ;;  %v331_v18 = vld [vmem:[#allocation7 + $0x130] sm:$0xff]  ;;  %v134_v36 = vlaneseq }
  0x51   :  { %174 = vmatpush1.msra.mxu0 %v93_v37  ;;  %747 = vmatprep.subr.mxu1 %v951_v0  ;;  %v298_v17 = vld [vmem:[#allocation7 + $0x28] sm:$0xff]  ;;  %v313_v19 = vld [vmem:[#allocation7 + $0xa0] sm:$0xff]  ;;  %v312_v21 = vld [vmem:[#allocation7 + $0x98] sm:$0xff] }
  0x52   :  { %175 = vmatprep.subr.mxu0 %v91_v39  ;;  %748 = vmatpush3.msra.mxu1 %v95_v41  ;;  %v297_v20 = vld [vmem:[#allocation7 + $0x20] sm:$0xff]  ;;  %v296_v22 = vld [vmem:[#allocation7 + $0x18] sm:$0xff]  ;;  %v330_v23 = vld [vmem:[#allocation7 + $0x128] sm:$0xff]  ;;  %v1049_v37 = vshrl.u32 %v134_v36, 7 }
  0x53   :  { %176 = vmatpush1.msra.mxu0 %v90_v40  ;;  %749 = vmatprep.subr.mxu1 %v951_v0  ;;  %v311_v24 = vld [vmem:[#allocation7 + $0x90] sm:$0xff]  ;;  %v329_v26 = vld [vmem:[#allocation7 + $0x120] sm:$0xff]  ;;  %v310_v27 = vld [vmem:[#allocation7 + $0x88] sm:$0xff] }
  0x54   :  { %177 = vmatprep.subr.mxu0 %v88_v42  ;;  %750 = vmatpush3.msra.mxu1 %v92_v44  ;;  %v295_v25 = vld [vmem:[#allocation7 + $0x10] sm:$0xff]  ;;  %v294_v28 = vld [vmem:[#allocation7 + $0x8] sm:$0xff]  ;;  %v328_v29 = vld [vmem:[#allocation7 + $0x118] sm:$0xff]  ;;  %v136_v38 = vsub.s32 0, %v1049_v37  ;;  %v140_v40 = vsub.s32 1, %v1049_v37  ;;  %v144_v41 = vsub.s32 2, %v1049_v37 }
  0x55   :  { %178 = vmatpush1.msra.mxu0 %v87_v43  ;;  %751 = vmatprep.subr.mxu1 %v951_v0  ;;  %v309_v30 = vld [vmem:[#allocation7 + $0x80] sm:$0xff]  ;;  %v327_v32 = vld [vmem:[#allocation7 + $0x110] sm:$0xff]  ;;  %v326_v33 = vld [vmem:[#allocation7 + $0x108] sm:$0xff] }
  0x56   :  { %179 = vmatprep.subr.mxu0 %v85_v45  ;;  %752 = vmatpush3.msra.mxu1 %v89_v47  ;;  %v293_v31 = vld [vmem:[#allocation7] sm:$0xff]  ;;  %v520_v35 = vld [vmem:[#allocation8 + $0xf8] sm:$0xff] }
  0x57   :  { %180 = vmatpush1.msra.mxu0 %v84_v46  ;;  %753 = vmatprep.subr.mxu1 %v951_v0  ;;  %v325_v34 = vld [vmem:[#allocation7 + $0x100] sm:$0xff]  ;;  %v132_v39 = vld [vmem:[%s1080_s2] sm:$0x7] }
  0x58   :  { %214 = vmatmul.mubr.f32.vlgmr.msra.gmra.mxu0 %v83_v48  ;;  %754 = vmatpush3.msra.mxu1 %v86_v49  ;;  %v137_v42 = vrot.slane %v132_v39, %v136_v38  ;;  %v141_v43 = vrot.slane %v132_v39, %v140_v40  ;;  %v145_v44 = vrot.slane %v132_v39, %v144_v41 }
  0x59   :  { %671 = vmatprep.subr.mxu0 %v324_v50  ;;  %756 = vmatmul.mubr.f32.vlgmr.msra.gmra.mxu1 %v83_v48 }
  0x5a   :  { %672 = vmatpush3.msra.mxu0 %v308_v51  ;;  %758 = vmatprep.subr.mxu1 %v951_v0 }
  0x5b   :  { %673 = vmatprep.subr.mxu0 %v323_v52  ;;  %759 = vmatpush3.msra.mxu1 %v340_v54 }
  0x5c   :  { %674 = vmatpush3.msra.mxu0 %v307_v53  ;;  %760 = vmatprep.subr.mxu1 %v951_v0 }
  0x5d   :  { %675 = vmatprep.subr.mxu0 %v322_v55  ;;  %761 = vmatpush3.msra.mxu1 %v339_v57  ;;  %v519_v55 = vld [vmem:[#allocation8 + $0xf0] sm:$0xff]  ;;  %v517_v57 = vld [vmem:[#allocation8 + $0xe0] sm:$0xff] }
  0x5e   :  { %676 = vmatpush3.msra.mxu0 %v306_v56  ;;  %762 = vmatprep.subr.mxu1 %v951_v0  ;;  %v518_v56 = vld [vmem:[#allocation8 + $0xe8] sm:$0xff] }
  0x5f   :  { %677 = vmatprep.subr.mxu0 %v321_v58  ;;  %763 = vmatpush3.msra.mxu1 %v338_v60  ;;  %v516_v58 = vld [vmem:[#allocation8 + $0xd8] sm:$0xff]  ;;  %v514_v60 = vld [vmem:[#allocation8 + $0xc8] sm:$0xff] }
  0x60   :  { %678 = vmatpush3.msra.mxu0 %v305_v59  ;;  %764 = vmatprep.subr.mxu1 %v951_v0  ;;  %v515_v59 = vld [vmem:[#allocation8 + $0xd0] sm:$0xff] }
  0x61   :  { %679 = vmatprep.subr.mxu0 %v320_v61  ;;  %765 = vmatpush3.msra.mxu1 %v337_v63  ;;  %v513_v61 = vld [vmem:[#allocation8 + $0xc0] sm:$0xff]  ;;  %v511_v63 = vld [vmem:[#allocation8 + $0xb0] sm:$0xff] }
  0x62   :  { %680 = vmatpush3.msra.mxu0 %v304_v62  ;;  %766 = vmatprep.subr.mxu1 %v951_v0  ;;  %v512_v62 = vld [vmem:[#allocation8 + $0xb8] sm:$0xff] }
  0x63   :  { %681 = vmatprep.subr.mxu0 %v319_v1  ;;  %767 = vmatpush3.msra.mxu1 %v336_v3  ;;  %v510_v1 = vld [vmem:[#allocation8 + $0xa8] sm:$0xff]  ;;  %v508_v3 = vld [vmem:[#allocation8 + $0x98] sm:$0xff] }
  0x64   :  { %682 = vmatpush3.msra.mxu0 %v303_v2  ;;  %768 = vmatprep.subr.mxu1 %v951_v0  ;;  %v509_v2 = vld [vmem:[#allocation8 + $0xa0] sm:$0xff] }
  0x65   :  { %683 = vmatprep.subr.mxu0 %v318_v4  ;;  %769 = vmatpush3.msra.mxu1 %v335_v6  ;;  %v507_v4 = vld [vmem:[#allocation8 + $0x90] sm:$0xff]  ;;  %v504_v6 = vld [vmem:[#allocation8 + $0x78] sm:$0xff] }
  0x66   :  { %684 = vmatpush3.msra.mxu0 %v302_v5  ;;  %770 = vmatprep.subr.mxu1 %v951_v0  ;;  %v505_v5 = vld [vmem:[#allocation8 + $0x80] sm:$0xff] }
  0x67   :  { %685 = vmatprep.subr.mxu0 %v317_v7  ;;  %771 = vmatpush3.msra.mxu1 %v334_v9  ;;  %v503_v7 = vld [vmem:[#allocation8 + $0x70] sm:$0xff]  ;;  %v501_v9 = vld [vmem:[#allocation8 + $0x60] sm:$0xff] }
  0x68   :  { %686 = vmatpush3.msra.mxu0 %v301_v8  ;;  %772 = vmatprep.subr.mxu1 %v951_v0  ;;  %v502_v8 = vld [vmem:[#allocation8 + $0x68] sm:$0xff] }
  0x69   :  { %687 = vmatprep.subr.mxu0 %v316_v10  ;;  %773 = vmatpush3.msra.mxu1 %v333_v12  ;;  %v500_v10 = vld [vmem:[#allocation8 + $0x58] sm:$0xff]  ;;  %v498_v12 = vld [vmem:[#allocation8 + $0x48] sm:$0xff] }
  0x6a   :  { %688 = vmatpush3.msra.mxu0 %v300_v11  ;;  %774 = vmatprep.subr.mxu1 %v951_v0  ;;  %v499_v11 = vld [vmem:[#allocation8 + $0x50] sm:$0xff] }
  0x6b   :  { %689 = vmatprep.subr.mxu0 %v315_v13  ;;  %775 = vmatpush3.msra.mxu1 %v332_v15  ;;  %v497_v13 = vld [vmem:[#allocation8 + $0x40] sm:$0xff]  ;;  %v495_v15 = vld [vmem:[#allocation8 + $0x30] sm:$0xff] }
  0x6c   :  { %690 = vmatpush3.msra.mxu0 %v299_v14  ;;  %776 = vmatprep.subr.mxu1 %v951_v0  ;;  %v496_v14 = vld [vmem:[#allocation8 + $0x38] sm:$0xff] }
  0x6d   :  { %691 = vmatprep.subr.mxu0 %v314_v16  ;;  %777 = vmatpush3.msra.mxu1 %v331_v18  ;;  %v494_v16 = vld [vmem:[#allocation8 + $0x28] sm:$0xff]  ;;  %v492_v18 = vld [vmem:[#allocation8 + $0x18] sm:$0xff] }
  0x6e   :  { %692 = vmatpush3.msra.mxu0 %v298_v17  ;;  %778 = vmatprep.subr.mxu1 %v951_v0  ;;  %v493_v17 = vld [vmem:[#allocation8 + $0x20] sm:$0xff] }
  0x6f   :  { %693 = vmatprep.subr.mxu0 %v313_v19  ;;  %790 = vmatprep.mubr.msk.f32.mxu1 %vm952_vm0, %v951_v0  ;;  %v491_v19 = vld [vmem:[#allocation8 + $0x10] sm:$0xff] }
  0x70   :  { %694 = vmatpush3.msra.mxu0 %v297_v20  ;;  %779 = vmatpush3.msra.mxu1 %v330_v23  ;;  %v490_v20 = vld [vmem:[#allocation8 + $0x8] sm:$0xff] }
  0x71   :  { %695 = vmatprep.subr.mxu0 %v312_v21  ;;  %780 = vmatprep.subr.mxu1 %v951_v0  ;;  %v489_v21 = vld [vmem:[#allocation8] sm:$0xff] }
  0x72   :  { %696 = vmatpush3.msra.mxu0 %v296_v22  ;;  %781 = vmatpush3.msra.mxu1 %v329_v26  ;;  %v653_v26 = vld [vmem:[%s1082_s4] ss:$0 sm:$0xff]  ;;  %s891_s4 = scalar_lea.vmem %s629_s11, 128 }
  0x73   :  { %697 = vmatprep.subr.mxu0 %v311_v24  ;;  %782 = vmatprep.subr.mxu1 %v951_v0  ;;  %p892_p6 = scmp.ne.s32.totalorder %s629_s11, %s891_s4  ;;  %p897_p8 = scmp.lt.s32.totalorder %s891_s4, %s891_s4 }
  0x74   :  { %698 = vmatpush3.msra.mxu0 %v295_v25  ;;  %783 = vmatpush3.msra.mxu1 %v328_v29 }
  0x75   :  { %699 = vmatprep.subr.mxu0 %v310_v27  ;;  %784 = vmatprep.subr.mxu1 %v951_v0  ;;  %p898_p9 = por %p897_p8, %p896_p7 }
  0x76   :  { %700 = vmatpush3.msra.mxu0 %v294_v28  ;;  %785 = vmatpush3.msra.mxu1 %v327_v32 }
  0x77   :  { %701 = vmatprep.subr.mxu0 %v309_v30  ;;  %786 = vmatprep.subr.mxu1 %v951_v0  ;;  %p899_p10 = pnand %p898_p9, %p892_p6 }
  0x78   :  { %702 = vmatpush3.msra.mxu0 %v293_v31  ;;  %787 = vmatpush3.msra.mxu1 %v326_v33  ;;  %v521_v31 = vld [vmem:[%s1084_s6] sm:$0x3] }
  0x79   :  { %533 = vmatprep.subr.mxu0 %v520_v35  ;;  %788 = vmatprep.subr.mxu1 %v951_v0  ;;  %v526_v32 = vrot.slane %v521_v31, %v136_v38  ;;  %v530_v33 = vrot.slane %v521_v31, %v140_v40 }
  0x7a   :  { %789 = vmatpush3.msra.mxu1 %v325_v34 }
 0x118   :  { %v215_v45 = vpop.f32.mrf.mxu0 }
 0x119   :  { %v216_v46 = vadd.f32 %v215_v45, %v137_v42  ;;  %v286_v48 = vpop.f32.mrf.mxu1 }
 0x11a   :  { %v217_v47 = vpop.f32.mrf.mxu0  ;;  %v287_v50 = vadd.f32 %v286_v48, %v145_v44 }
 0x11b   :  { %v218_v49 = vadd.f32 %v217_v47, %v141_v43  ;;  %v757_v51 = vpop.f32.mrf.mxu1  ;;  %v290_v54 = vmax.f32 %v216_v46, 0.0 }
 0x11c   :  { %v292_v53 = vmax.f32 %v287_v50, 0.0 }
 0x11d   :  { %v291_v52 = vmax.f32 %v218_v49, 0.0 }
 0x11e   :  { %791 = vmatmul.mubr.f32.vlgmr.msra.gmra.mxu1 %v292_v53 }
 0x11f   :  { %412 = vmatprep.mubr.f32.mxu0 %v291_v52 }
 0x120   :  { %413 = vmatmul.mubr.f32.vlgmr.msra.gmra.mxu0 %v290_v54 }
 0x121   :  { %534 = vmatpush1.msra.mxu0 %v519_v55  ;;  %597 = vmatprep.mubr.f32.mxu0 %v951_v0  ;;  %v506_v0 = vld [vmem:[#allocation8 + $0x88] sm:$0xff] }
 0x122   :  { %535 = vmatprep.subr.mxu0 %v518_v56 }
 0x123   :  { %536 = vmatpush1.msra.mxu0 %v517_v57 }
 0x124   :  { %537 = vmatprep.subr.mxu0 %v516_v58 }
 0x125   :  { %538 = vmatpush1.msra.mxu0 %v515_v59 }
 0x126   :  { %539 = vmatprep.subr.mxu0 %v514_v60 }
 0x127   :  { %540 = vmatpush1.msra.mxu0 %v513_v61 }
 0x128   :  { %541 = vmatprep.subr.mxu0 %v512_v62 }
 0x129   :  { %542 = vmatpush1.msra.mxu0 %v511_v63 }
 0x12a   :  { %543 = vmatprep.subr.mxu0 %v510_v1 }
 0x12b   :  { %544 = vmatpush1.msra.mxu0 %v509_v2 }
 0x12c   :  { %545 = vmatprep.subr.mxu0 %v508_v3 }
 0x12d   :  { %546 = vmatpush1.msra.mxu0 %v507_v4 }
 0x12e   :  { %547 = vmatprep.subr.mxu0 %v506_v0 }
 0x12f   :  { %548 = vmatpush1.msra.mxu0 %v505_v5 }
 0x130   :  { %549 = vmatprep.subr.mxu0 %v504_v6 }
 0x131   :  { %550 = vmatpush1.msra.mxu0 %v503_v7 }
 0x132   :  { %551 = vmatprep.subr.mxu0 %v502_v8 }
 0x133   :  { %552 = vmatpush1.msra.mxu0 %v501_v9 }
 0x134   :  { %553 = vmatprep.subr.mxu0 %v500_v10 }
 0x135   :  { %554 = vmatpush1.msra.mxu0 %v499_v11 }
 0x136   :  { %555 = vmatprep.subr.mxu0 %v498_v12 }
 0x137   :  { %556 = vmatpush1.msra.mxu0 %v497_v13 }
 0x138   :  { %557 = vmatprep.subr.mxu0 %v496_v14 }
 0x139   :  { %558 = vmatpush1.msra.mxu0 %v495_v15 }
 0x13a   :  { %559 = vmatprep.subr.mxu0 %v494_v16 }
 0x13b   :  { %560 = vmatpush1.msra.mxu0 %v493_v17 }
 0x13c   :  { %561 = vmatprep.subr.mxu0 %v492_v18 }
 0x13d   :  { %562 = vmatpush1.msra.mxu0 %v491_v19 }
 0x13e   :  { %563 = vmatprep.subr.mxu0 %v490_v20 }
 0x13f   :  { %564 = vmatpush1.msra.mxu0 %v489_v21 }
 0x1de   :  { %v484_v22 = vpop.f32.mrf.mxu1 }
 0x1e0   :  { %v703_v23 = vpop.f32.mrf.mxu0  ;;  %v792_v24 = vpop.f32.mrf.mxu1 }
 0x1e2   :  { %v704_v25 = vpop.f32.mrf.mxu0 }
 0x1e3   :  { %v705_v27 = vadd.f32 %v704_v25, %v703_v23 }
 0x1e5   :  { %v415_v28 = vadd.f32 %v705_v27, %v653_v26 }
 0x1e7   :  { %v485_v29 = vadd.f32 %v484_v22, %v415_v28 }
 0x1e9   :  { %v488_v30 = vmax.f32 %v485_v29, 0.0 }
 0x1eb   :  { %598 = vmatmul.mubr.f32.vlgmr.msra.gmra.mxu0 %v488_v30 }
 0x2ab   :  { %v599_v34 = vpop.f32.mrf.mxu0 }
 0x2ac   :  { %v600_v35 = vadd.f32 %v599_v34, %v526_v32 }
 0x2ad   :  { %v601_v36 = vpop.f32.mrf.mxu0 }
 0x2ae   :  { %620 = vst [vmem:[#allocation10] sm:$0xff] %v600_v35  ;;  %v602_v39 = vadd.f32 %v601_v36, %v530_v33 }
 0x2af   :  { %902 = shalt.err (!%p899_p10)
}
 0x2b0   :  { %631 = dma.vmem_to_hbm [thread:$0]  %s629_s11, 128, %s1085_s7, [#allocation4]   ;;  %v605_v38 = vand.u32 2147483647, %v602_v39  ;;  %v604_v49 = vmax.f32 %v602_v39, 0.0 }
 0x2b1   :  { %s954_s13 = smov [#allocation11]  }
 0x2b2   :  { %v606_v37 = vsub.f32 0.0, %v605_v38  ;;  %s638_s14 = sshll.u32 %s954_s13, 4  ;;  %s639_s14 = int_to_ptr.vmem [resolvable:$true] %s638_s14 }
 0x2b3   :  { %s911_s7 = scalar_lea.vmem %s639_s14, 128  ;;  %p916_p12 = scmp.lt.s32.totalorder %s639_s14, %s639_s14 }
 0x2b4   :  { %v607_v40 = vmul.f32 1.442695, %v606_v37  ;;  %p912_p11 = scmp.ne.s32.totalorder %s639_s14, %s911_s7  ;;  %p917_p13 = scmp.lt.s32.totalorder %s911_s7, %s911_s7 }
 0x2b6   :  { %807 = vpow2.f32 %v607_v40  ;;  %p918_p0 = por %p917_p13, %p916_p12 }
 0x2b8   :  { %p919_p1 = pnand %p918_p0, %p912_p11 }
 0x2c3   :  { %v808_v41 = vpop.eup %807 }
 0x2c4   :  { %v609_v42 = vadd.f32 1.0, %v808_v41  ;;  %v612_v43 = vmul.f32 -0.5, %v808_v41  ;;  %v615_v45 = vand.u32 2147483647, %v808_v41 }
 0x2c6   :  { %809 = vlog2.f32 %v609_v42  ;;  %v613_v44 = vadd.f32 1.0, %v612_v43  ;;  %vm616_vm1 = vcmp.lt.f32.partialorder %v615_v45, 0.0004427343 }
 0x2c8   :  { %v614_v48 = vmul.f32 %v808_v41, %v613_v44 }
 0x2d3   :  { %v810_v46 = vpop.eup %809 }
 0x2d4   :  { %v611_v47 = vmul.f32 0.6931472, %v810_v46 }
 0x2d6   :  { %v617_v50 = vsel %vm616_vm1, %v614_v48, %v611_v47 }
 0x2d7   :  { %v618_v51 = vadd.f32 %v617_v50, %v604_v49 }
 0x2d9   :  { %v619_v52 = vadd.f32 1e-06, %v618_v51 }
 0x2db   :  { %621 = vst [vmem:[#allocation11] sm:$0xff] %v619_v52 }
 0x2dc   :  { %922 = shalt.err (!%p919_p1)
}
 0x2dd   :  { %641 = dma.vmem_to_hbm [thread:$0]  %s639_s14, 128, %s1086_s8, [#allocation12]  }
 0x2de   :  { %937 = dma.done.wait [#allocation4], 128  }
 0x2df   :  { %938 = vsyncadd [#allocation4], 4294967168 }
 0x2e0   :  { %939 = dma.done.wait [#allocation12], 128  }
 0x2e1   :  { %940 = vsyncadd [#allocation12], 4294967168 }
 0x2e2   :  { %648 = vsyncpa [#allocation3], 1 }
 0x2e3   :  { %649 = vsyncpa [#allocation6], 1 }
 0x2e4   :  { %650 = vsyncpa [#allocation9], 1 }
 0x2e5   :  { %651 = vsyncpa [#allocation4], 1 }
 0x2e6   :  { %652 = vsyncpa [#allocation12], 1 }

</bundles_post_ra>
